<compile_context>
chip_gen: v6e
topology: v6e:2x2x1
jax: 0.10.0
libtpu: 0.0.40
codegen_flags: <defaults>
</compile_context>

<pallas_src>
import functools
import math

import jax
import jax.numpy as jnp
from jax import lax
from jax.experimental import pallas as pl
from jax.experimental.pallas import tpu as pltpu


# ---------------------------------------------------------------------------
# chip-aware configuration
# ---------------------------------------------------------------------------

def _vmem_capacity_bytes() -> int:
    try:
        return int(pltpu.get_tpu_info().vmem_capacity_bytes)
    except Exception:
        return 64 * 1024 * 1024          # conservative default (v7x per-core VMEM)


_VMEM_CAP = _vmem_capacity_bytes()
_BIG_VMEM = _VMEM_CAP >= 100 * 1024 * 1024     # v5e / v6e (128 MiB) vs v7x (64 MiB)

# Larger linear tiles on v5e/v6e (more VMEM, lower HBM-BW roofline headroom).
_LIN_SEQ_TILE = 512 if _BIG_VMEM else 256
_LIN_N_TILE = 1024 if _BIG_VMEM else 512


def _compiler_params(dimension_semantics, est_vmem_bytes):
    # Scoped-VMEM limit: generous (2x estimate, >=32 MiB) but always <= 75% of
    # the chip's physical VMEM (<=48 MiB on v7x, up to 96 MiB on v5e/v6e).
    cap = (3 * _VMEM_CAP) // 4
    limit = int(min(max(2 * est_vmem_bytes, 32 * 1024 * 1024), cap))
    return pltpu.CompilerParams(dimension_semantics=dimension_semantics,
                                vmem_limit_bytes=limit)


def _sublane_multiple(dtype) -> int:
    # 8 rows per vreg at 32 bit, 16 at 16 bit, 32 at 8 bit.
    return 8 * max(1, 4 // jnp.dtype(dtype).itemsize)


def _pick_tile(dim, pref, multiples):
    """Largest tile <= pref that divides `dim` and is aligned to one of
    `multiples` (tried in order).  Falls back to the full dimension, which is
    always a legal block size."""
    if dim <= pref:
        return dim
    for m in multiples:
        t = (pref // m) * m
        while t >= m:
            if dim % t == 0:
                return t
            t -= m
    # TODO(synk): for awkward dims (e.g. primes) pad the array or use a cdiv
    # grid with a masked tail instead of falling back to the full dimension.
    return dim


# ---------------------------------------------------------------------------
# tiled linear:  y[b, s, n] = x[b, s, :] @ w[:, n] + bias[n]
# ---------------------------------------------------------------------------

def _linear_kernel(x_ref, w_ref, b_ref, o_ref):
    # x_ref: (ts, K)   w_ref: (K, tn)   b_ref: (1, tn)   o_ref: (ts, tn)
    acc = jnp.dot(x_ref[...], w_ref[...], preferred_element_type=jnp.float32)
    o_ref[...] = (acc + b_ref[...].astype(jnp.float32)).astype(o_ref.dtype)


def _linear(x, w, bias, *, out_dtype, seq_tile=None, n_tile=None):
    """x: (B, S, K); w: (K, N) in (in, out) layout; bias: (N,) f32."""
    seq_tile = _LIN_SEQ_TILE if seq_tile is None else seq_tile
    n_tile = _LIN_N_TILE if n_tile is None else n_tile
    B, S, K = x.shape
    K2, N = w.shape
    assert K == K2
    isz = jnp.dtype(x.dtype).itemsize
    wsz = jnp.dtype(w.dtype).itemsize
    sub = _sublane_multiple(x.dtype)

    # Blocks span the full K; bound their footprint so large-E configs stay in
    # VMEM.  TODO(synk): add a K reduction grid axis + f32 accumulator for
    # very large K instead of shrinking tiles.
    max_rows = max(sub, (2 * 1024 * 1024) // (K * isz))
    max_cols = max(128, (4 * 1024 * 1024) // (K * wsz))
    ts = _pick_tile(S, min(seq_tile, max_rows), (sub, 8))
    tn = _pick_tile(N, min(n_tile, max_cols), (128,))
    ns, nn = S // ts, N // tn

    # Weight-resident grid order: the weight/bias tile index depends only on
    # the outermost axis, so each (K, tn) tile is fetched ~once and reused
    # across all B*ns activation tiles.
    x_spec = pl.BlockSpec((None, ts, K), lambda ni, b, si: (b, si, 0))
    w_spec = pl.BlockSpec((K, tn), lambda ni, b, si: (0, ni))
    b_spec = pl.BlockSpec((1, tn), lambda ni, b, si: (0, ni))
    o_spec = pl.BlockSpec((None, ts, tn), lambda ni, b, si: (b, si, ni))

    est = (2 * ts * K * isz + 2 * K * tn * wsz + 2 * tn * 4
           + 2 * ts * tn * jnp.dtype(out_dtype).itemsize)

    return pl.pallas_call(
        _linear_kernel,
        out_shape=jax.ShapeDtypeStruct((B, S, N), out_dtype),
        grid_spec=pltpu.PrefetchScalarGridSpec(
            num_scalar_prefetch=0,
            grid=(nn, B, ns),
            in_specs=[x_spec, w_spec, b_spec],
            out_specs=o_spec,
        ),
        compiler_params=_compiler_params(("parallel", "parallel", "parallel"),
                                         est),
    )(x, w, bias.reshape(1, N).astype(jnp.float32))


def _linear_qkv_fused(x, w3, b3, *, out_dtype, seq_tile=None, n_tile=None):
    """Fused Q/K/V projection (self-attention fast path).

    x: (B, S, K);  w3: (3, K, E) stacked (in, out) weights;  b3: (3, 1, E) f32.
    Returns qkv: (3, B, S, E).  One pallas_call; the activation tile index is
    constant across the inner (proj, col) axes, so x is read from HBM once."""
    seq_tile = _LIN_SEQ_TILE if seq_tile is None else seq_tile
    n_tile = _LIN_N_TILE if n_tile is None else n_tile
    B, S, K = x.shape
    P, K2, N = w3.shape
    assert K == K2 and P == 3
    isz = jnp.dtype(x.dtype).itemsize
    wsz = jnp.dtype(w3.dtype).itemsize
    sub = _sublane_multiple(x.dtype)
    max_rows = max(sub, (2 * 1024 * 1024) // (K * isz))
    max_cols = max(128, (4 * 1024 * 1024) // (K * wsz))
    ts = _pick_tile(S, min(seq_tile, max_rows), (sub, 8))
    tn = _pick_tile(N, min(n_tile, max_cols), (128,))
    ns, nn = S // ts, N // tn

    x_spec = pl.BlockSpec((None, ts, K), lambda b, si, p, ni: (b, si, 0))
    w_spec = pl.BlockSpec((None, K, tn), lambda b, si, p, ni: (p, 0, ni))
    b_spec = pl.BlockSpec((None, 1, tn), lambda b, si, p, ni: (p, 0, ni))
    o_spec = pl.BlockSpec((None, None, ts, tn),
                          lambda b, si, p, ni: (p, b, si, ni))

    est = (2 * ts * K * isz + 2 * K * tn * wsz + 2 * tn * 4
           + 2 * ts * tn * jnp.dtype(out_dtype).itemsize)

    return pl.pallas_call(
        _linear_kernel,
        out_shape=jax.ShapeDtypeStruct((P, B, S, N), out_dtype),
        grid_spec=pltpu.PrefetchScalarGridSpec(
            num_scalar_prefetch=0,
            grid=(B, ns, P, nn),
            in_specs=[x_spec, w_spec, b_spec],
            out_specs=o_spec,
        ),
        compiler_params=_compiler_params(
            ("parallel", "parallel", "arbitrary", "arbitrary"), est),
    )(x, w3, b3)


# ---------------------------------------------------------------------------
# flash attention (online softmax), all heads per grid step, (B, S, E) layout
# ---------------------------------------------------------------------------

def _flash_kernel(q_ref, k_ref, v_ref, o_ref, m_sc, l_sc, acc_sc, *,
                  num_heads, head_dim):
    """One (q-tile, kv-tile) step for ALL heads.

    q_ref: (tq, E)  k_ref/v_ref: (tk, E)  o_ref: (tq, E)
    m_sc/l_sc: (tq, H) f32     acc_sc: (H, tq, D) f32
    """
    H, D = num_heads, head_dim
    kv = pl.program_id(2)

    @pl.when(kv == 0)
    def _init():
        m_sc[...] = jnp.full_like(m_sc, -jnp.inf)
        l_sc[...] = jnp.zeros_like(l_sc)
        acc_sc[...] = jnp.zeros_like(acc_sc)

    # TODO(synk): attention mask (mask=None path only) is not implemented.
    for h in range(H):                       # static unroll over heads
        lo, hi = h * D, (h + 1) * D
        q_h = q_ref[:, lo:hi]                # (tq, D), pre-scaled by 1/sqrt(D)
        k_h = k_ref[:, lo:hi]                # (tk, D)
        v_h = v_ref[:, lo:hi]                # (tk, D)

        # Contract the last dims of both operands: MXU-direct, no K transpose.
        s = lax.dot_general(q_h, k_h, (((1,), (1,)), ((), ())),
                            preferred_element_type=jnp.float32)     # (tq, tk)

        m_prev = m_sc[:, h:h + 1]
        m_new = jnp.maximum(m_prev, s.max(axis=-1, keepdims=True))
        alpha = jnp.exp(m_prev - m_new)
        p = jnp.exp(s - m_new)
        l_sc[:, h:h + 1] = alpha * l_sc[:, h:h + 1] + p.sum(axis=-1,
                                                            keepdims=True)
        acc_sc[h] = alpha * acc_sc[h] + jnp.dot(
            p.astype(v_h.dtype), v_h, preferred_element_type=jnp.float32)
        m_sc[:, h:h + 1] = m_new

    @pl.when(kv == pl.num_programs(2) - 1)
    def _finalize():
        # Exact reciprocal (once per q tile); concatenate the heads so the
        # output store is a single lane-dense (tq, E) slab.
        parts = [acc_sc[h] * (1.0 / l_sc[:, h:h + 1]) for h in range(H)]
        o_ref[...] = jnp.concatenate(parts, axis=-1).astype(o_ref.dtype)


def _flash_tiles(Sq, Skv, E, dtype, q_tile, kv_tile):
    isz = jnp.dtype(dtype).itemsize
    sub = _sublane_multiple(dtype)
    # q/k/v blocks span all heads (full E); bound rows so each block <= ~2 MiB.
    max_rows = max(8, (2 * 1024 * 1024) // (E * isz))
    tq = _pick_tile(Sq, max(sub, min(q_tile, max_rows)), (sub, 8))
    # kv tile is the lane dim of the scores / exp / row reductions: prefer 128.
    tk = _pick_tile(Skv, max(8, min(kv_tile, max_rows)), (128, sub, 8))
    return tq, tk


def _flash_call(args, in_specs, *, B, Sq, E, H, tq, tk, nk, dtype, out_dtype):
    D = E // H
    nq = Sq // tq
    isz = jnp.dtype(dtype).itemsize
    osz = jnp.dtype(out_dtype).itemsize
    est = (2 * tq * E * isz            # q tiles (double buffered)
           + 4 * tk * E * isz          # k + v tiles
           + 2 * tq * E * osz          # output tiles
           + 2 * tq * 128 * 4          # m, l scratch (lane-padded)
           + H * tq * max(D, 128) * 4) # f32 accumulator (lane-padded)
    kernel = functools.partial(_flash_kernel, num_heads=H, head_dim=D)
    return pl.pallas_call(
        kernel,
        out_shape=jax.ShapeDtypeStruct((B, Sq, E), out_dtype),
        grid_spec=pltpu.PrefetchScalarGridSpec(
            num_scalar_prefetch=0,
            grid=(B, nq, nk),
            in_specs=list(in_specs),
            out_specs=pl.BlockSpec((None, tq, E), lambda b, qi, ki: (b, qi, 0)),
            scratch_shapes=[
                pltpu.VMEM((tq, H), jnp.float32),     # running max per head
                pltpu.VMEM((tq, H), jnp.float32),     # running denominator
                pltpu.VMEM((H, tq, D), jnp.float32),  # f32 output accumulator
            ],
        ),
        compiler_params=_compiler_params(("parallel", "parallel", "arbitrary"),
                                         est),
    )(*args)


def _flash_attention(qp, kp, vp, *, num_heads, out_dtype,
                     q_tile=256, kv_tile=256):
    """qp: (B, Sq, E) pre-scaled Q projection; kp/vp: (B, Skv, E)."""
    B, Sq, E = qp.shape
    _, Skv, _ = kp.shape
    tq, tk = _flash_tiles(Sq, Skv, E, qp.dtype, q_tile, kv_tile)
    specs = (pl.BlockSpec((None, tq, E), lambda b, qi, ki: (b, qi, 0)),
             pl.BlockSpec((None, tk, E), lambda b, qi, ki: (b, ki, 0)),
             pl.BlockSpec((None, tk, E), lambda b, qi, ki: (b, ki, 0)))
    return _flash_call((qp, kp, vp), specs, B=B, Sq=Sq, E=E, H=num_heads,
                       tq=tq, tk=tk, nk=Skv // tk, dtype=qp.dtype,
                       out_dtype=out_dtype)


def _flash_attention_fused(qkv, *, num_heads, out_dtype,
                           q_tile=256, kv_tile=256):
    """qkv: (3, B, S, E) stacked (pre-scaled Q, K, V) projections."""
    _, B, S, E = qkv.shape
    tq, tk = _flash_tiles(S, S, E, qkv.dtype, q_tile, kv_tile)
    specs = (pl.BlockSpec((None, None, tq, E), lambda b, qi, ki: (0, b, qi, 0)),
             pl.BlockSpec((None, None, tk, E), lambda b, qi, ki: (1, b, ki, 0)),
             pl.BlockSpec((None, None, tk, E), lambda b, qi, ki: (2, b, ki, 0)))
    return _flash_call((qkv, qkv, qkv), specs, B=B, Sq=S, E=E, H=num_heads,
                       tq=tq, tk=tk, nk=S // tk, dtype=qkv.dtype,
                       out_dtype=out_dtype)


# ---------------------------------------------------------------------------
# full MultiHeadAttention forward (eval mode)
# ---------------------------------------------------------------------------

def multi_head_attention(query, key, value, params, *, num_heads,
                         compute_dtype=None):
    """query: (B, Sq, E); key/value: (B, Skv, E).

    params: torch-layout weights W (out, in) and biases b (out,) under keys
    wq/wk/wv/wo and bq/bk/bv/bo.  Dropout layers are identity (eval mode)."""
    B, Sq, E = query.shape
    _, Skv, _ = key.shape
    H = num_heads
    assert E % H == 0
    D = E // H

    # MXU operand dtype follows the inputs (pass bf16 or compute_dtype=bf16 for
    # full-rate bf16 MXU); accumulation is always f32 inside the kernels.
    cdt = (jnp.dtype(compute_dtype) if compute_dtype is not None
           else jnp.dtype(query.dtype))
    out_dtype = query.dtype

    # Present weights as (in, out) so kernels compute x @ W + b, and fold the
    # 1/sqrt(D) attention scale into the Q projection (zero kernel cost).
    scale = 1.0 / math.sqrt(D)
    wq = (params["wq"].T * scale).astype(cdt)
    bq = (params["bq"] * scale).astype(jnp.float32)
    wk = params["wk"].T.astype(cdt)
    bk = params["bk"].astype(jnp.float32)
    wv = params["wv"].T.astype(cdt)
    bv = params["bv"].astype(jnp.float32)
    wo = params["wo"].T.astype(cdt)
    bo = params["bo"].astype(jnp.float32)

    if (query is key) and (key is value):
        # Self-attention fast path: one fused QKV projection, x read once.
        x = query.astype(cdt)
        w3 = jnp.stack([wq, wk, wv], axis=0)                      # (3, E, E)
        b3 = jnp.stack([bq, bk, bv], axis=0).reshape(3, 1, E)     # (3, 1, E)
        qkv = _linear_qkv_fused(x, w3, b3, out_dtype=cdt)         # (3, B, S, E)
        ctx = _flash_attention_fused(qkv, num_heads=H, out_dtype=cdt)
    else:
        qx = query.astype(cdt)
        kx = key.astype(cdt)
        vx = value.astype(cdt)
        qp = _linear(qx, wq, bq, out_dtype=cdt)
        kp = _linear(kx, wk, bk, out_dtype=cdt)
        vp = _linear(vx, wv, bv, out_dtype=cdt)
        ctx = _flash_attention(qp, kp, vp, num_heads=H, out_dtype=cdt)

    # ctx is already (B, Sq, E) (heads merged inside the kernel): no transposes.
    return _linear(ctx, wo, bo, out_dtype=out_dtype)


# ---------------------------------------------------------------------------
# pure-JAX reference (mirrors the PyTorch forward in eval mode)
# ---------------------------------------------------------------------------

def _reference_mha(query, key, value, params, *, num_heads):
    B, Sq, E = query.shape
    D = E // num_heads

    def lin(x, w, b):          # torch: y = x @ W.T + b
        return x @ w.T + b

    q = lin(query, params["wq"], params["bq"]).reshape(B, Sq, num_heads, D).transpose(0, 2, 1, 3)
    k = lin(key,   params["wk"], params["bk"]).reshape(B, -1, num_heads, D).transpose(0, 2, 1, 3)
    v = lin(value, params["wv"], params["bv"]).reshape(B, -1, num_heads, D).transpose(0, 2, 1, 3)

    attn = jnp.einsum("bhqd,bhkd->bhqk", q / math.sqrt(D), k)
    attn = jax.nn.softmax(attn, axis=-1)
    out = jnp.einsum("bhqk,bhkd->bhqd", attn, v)
    out = out.transpose(0, 2, 1, 3).reshape(B, Sq, E)
    return lin(out, params["wo"], params["bo"])


if __name__ == "__main__":
    B, S, E, H = 2, 8, 32, 4   # batch, seq, embedding_dim, num_heads

    key0 = jax.random.PRNGKey(0)
    keys = jax.random.split(key0, 16)

    def init_linear(kw, kb, fan_in):
        bound = 1.0 / math.sqrt(fan_in)
        w = jax.random.uniform(kw, (E, E), jnp.float32, -bound, bound)
        b = jax.random.uniform(kb, (E,), jnp.float32, -bound, bound)
        return w, b

    wq, bq = init_linear(keys[0], keys[1], E)
    wk, bk = init_linear(keys[2], keys[3], E)
    wv, bv = init_linear(keys[4], keys[5], E)
    wo, bo = init_linear(keys[6], keys[7], E)
    params = dict(wq=wq, bq=bq, wk=wk, bk=bk, wv=wv, bv=bv, wo=wo, bo=bo)

    query = jax.random.normal(keys[8], (B, S, E), jnp.float32)
    key_ = jax.random.normal(keys[9], (B, S, E), jnp.float32)
    value = jax.random.normal(keys[10], (B, S, E), jnp.float32)

    # 1) generic path (distinct query / key / value tensors)
    out = multi_head_attention(query, key_, value, params, num_heads=H)
    out = jax.block_until_ready(out)
    ref = _reference_mha(query, key_, value, params, num_heads=H)
    assert out.shape == (B, S, E)
    assert jnp.allclose(out, ref, atol=2e-3, rtol=2e-3), "mismatch vs reference"

    # 2) self-attention fast path (fused QKV projection, x read once)
    out_sa = multi_head_attention(query, query, query, params, num_heads=H)
    out_sa = jax.block_until_ready(out_sa)
    ref_sa = _reference_mha(query, query, query, params, num_heads=H)
    assert jnp.allclose(out_sa, ref_sa, atol=2e-3, rtol=2e-3), \
        "mismatch vs reference (self-attention path)"

    print("KERNEL_OK")
</pallas_src>

<mosaic_0001>
module attributes {stable_mosaic.version = 11 : i64} {
  func.func @_linear_kernel(%arg0: i32, %arg1: i32, %arg2: i32, %arg3: memref<1x8x32xf32, #tpu.memory_space<vmem>>, %arg4: memref<32x32xf32, #tpu.memory_space<vmem>>, %arg5: memref<1x32xf32, #tpu.memory_space<vmem>>, %arg6: memref<1x8x32xf32, #tpu.memory_space<vmem>>) attributes {dimension_semantics = [#tpu.dimension_semantics<parallel>, #tpu.dimension_semantics<parallel>, #tpu.dimension_semantics<parallel>], iteration_bounds = array<i64: 1, 2, 1>, scalar_prefetch = 0 : i64, scratch_operands = 0 : i64, tpu.core_type = #tpu.core_type<tc>, window_params = [{transform_indices = @transform_0, window_bounds = array<i64: 1, 8, 32>}, {transform_indices = @transform_1, window_bounds = array<i64: 32, 32>}, {transform_indices = @transform_2, window_bounds = array<i64: 1, 32>}, {transform_indices = @transform_3, window_bounds = array<i64: 1, 8, 32>}]} {
    %c0 = arith.constant 0 : index
    %c0_0 = arith.constant 0 : index
    %c0_1 = arith.constant 0 : index
    %0 = vector.load %arg3[%c0, %c0_0, %c0_1] : memref<1x8x32xf32, #tpu.memory_space<vmem>>, vector<1x8x32xf32>
    %1 = vector.shape_cast %0 : vector<1x8x32xf32> to vector<8x32xf32>
    %c0_2 = arith.constant 0 : index
    %c0_3 = arith.constant 0 : index
    %2 = vector.load %arg4[%c0_2, %c0_3] : memref<32x32xf32, #tpu.memory_space<vmem>>, vector<32x32xf32>
    %cst = arith.constant dense<0.000000e+00> : vector<8x32xf32>
    %3 = tpu.matmul %1, %2, %cst {dimension_numbers = #tpu.dot_dimension_numbers<[1], [0], [0], [1], [0, 0, 1, 1], [], []>} : vector<8x32xf32>, vector<32x32xf32>, vector<8x32xf32> -> vector<8x32xf32>
    %c0_4 = arith.constant 0 : index
    %c0_5 = arith.constant 0 : index
    %4 = vector.load %arg5[%c0_4, %c0_5] : memref<1x32xf32, #tpu.memory_space<vmem>>, vector<1x32xf32>
    %5 = vector.broadcast %4 : vector<1x32xf32> to vector<8x32xf32>
    %6 = arith.addf %3, %5 : vector<8x32xf32>
    %c0_6 = arith.constant 0 : index
    %c0_7 = arith.constant 0 : index
    %c0_8 = arith.constant 0 : index
    %7 = vector.load %arg6[%c0_6, %c0_7, %c0_8] : memref<1x8x32xf32, #tpu.memory_space<vmem>>, vector<1x8x32xf32>
    %8 = vector.shape_cast %7 : vector<1x8x32xf32> to vector<8x32xf32>
    %9 = vector.shape_cast %6 : vector<8x32xf32> to vector<1x8x32xf32>
    tpu.vector_store %arg6[%c0_6, %c0_7, %c0_8], %9 {strides = array<i32>} : memref<1x8x32xf32, #tpu.memory_space<vmem>>, vector<1x8x32xf32>,
    return
  }
  func.func @transform_0(%arg0: i32, %arg1: i32, %arg2: i32) -> (i32, i32, i32) {
    %c0_i32 = arith.constant 0 : i32
    %c0_i32_0 = arith.constant 0 : i32
    return %arg1, %arg2, %c0_i32 : i32, i32, i32
  }
  func.func @transform_1(%arg0: i32, %arg1: i32, %arg2: i32) -> (i32, i32) {
    %c0_i32 = arith.constant 0 : i32
    %c0_i32_0 = arith.constant 0 : i32
    return %c0_i32, %arg0 : i32, i32
  }
  func.func @transform_2(%arg0: i32, %arg1: i32, %arg2: i32) -> (i32, i32) {
    %c0_i32 = arith.constant 0 : i32
    %c0_i32_0 = arith.constant 0 : i32
    return %c0_i32, %arg0 : i32, i32
  }
  func.func @transform_3(%arg0: i32, %arg1: i32, %arg2: i32) -> (i32, i32, i32) {
    %c0_i32 = arith.constant 0 : i32
    return %arg1, %arg2, %arg0 : i32, i32, i32
  }
}

</mosaic_0001>

<bundles_post_ra>
// kernel: tpu_custom_call.1
= control target key start
LH: loop header
LB: loop body
LE: loop exit
PB: predicated region body
PF: predicated region fallthrough
CT: control target
= control target key end

     0   :  { %8 = vsyncpa [#allocation3], 0  ;;  %s913_s0 = inlined_call_operand.hbm [shape: f32[2,8,32], index: 0, kind: input, shape index: {}]   ;;  %s914_s1 = inlined_call_operand.hbm [shape: f32[32,32], index: 1, kind: input, shape index: {}]   ;;  %s915_s2 = inlined_call_operand.vmem [shape: f32[1,32], index: 2, kind: input, shape index: {}]   ;;  %s916_s3 = inlined_call_operand.hbm [shape: f32[2,8,32], index: 3, kind: output, shape index: {}]  }
   0x1   :  { %10 = vsyncpa [#allocation3 + $0x1], 0 }
   0x2   :  { %11 = vsyncpa [#allocation6], 0 }
   0x3   :  { %12 = vsyncpa [#allocation4], 0 }
   0x4   :  { %14 = vsyncpa [#allocation4 + $0x1], 0  ;;  %s737_s12 = smov 0   ;;  %s739_s13 = smov 0  }
   0x5   :  { %s741_s14 = smov 0   ;;  %s743_s15 = smov 0  }
   0x6   :  { %s745_s16 = smov 0   ;;  %s747_s17 = smov 0  }
   0x7 LB: > { %s459_s18 = sadd.s32 4294967295, %s708_s17   ;;  %s460_s19 = sadd.s32 4294967294, %s708_s17   ;;  %s708_s17 = sphi %s747_s17, %s20_s17   ;;  %s704_s16 = sphi %s745_s16, %s934_s16   ;;  %s700_s15 = sphi %s743_s15, %s933_s15   ;;  %s696_s14 = sphi %s741_s14, %s932_s14   ;;  %s692_s13 = sphi %s739_s13, %s931_s13   ;;  %s688_s12 = sphi %s737_s12, %s930_s12  }
   0x8   : > { %p61_p0 = scmp.ne.s32.totalorder %s692_s13, %s688_s12  ;;  %p771_p1 = scmp.eq.s32.totalorder %s459_s18, 0 }
   0x9   : > { %p775_p2 = scmp.eq.s32.totalorder %s459_s18, 1  ;;  %p147_p3 = scmp.eq.s32.totalorder %s460_s19, 1 }
   0xa   : > { %p781_p4 = por %p771_p1, %p61_p0  ;;  %p461_p5 = scmp.ge.s32.totalorder %s708_s17, 1 }
   0xb   : > { %p786_p6 = por %p147_p3, %p61_p0  ;;  %p154_p7 = scmp.lt.s32.totalorder %s708_s17, 3 }
   0xc   : > { %s920_s22 = scalar_select %p781_p4, 1, 0 }
   0xd   : > { %s921_s23 = scalar_select %p786_p6, 1, 0 }
   0xe   : > { %p791_p8 = pnand %p461_p5, %p154_p7  ;;  %s710_s25 = smov [#allocation5]  }
   0xf   : > { %s168_s26 = sshll.u32 %s710_s25, 4  ;;  %s35_s28 = sadd.s32 1, %s704_s16  ;;  %s169_s26 = int_to_ptr.vmem [resolvable:$true] %s168_s26 }
  0x10   : > { %p501_p9 = pneg %p791_p8  ;;  %s581_s29 = scalar_lea.vmem %s169_s26, 512 }
  0x11   : > { %p582_p13 = scmp.ne.s32.totalorder %s169_s26, %s581_s29  ;;  %p589_p5 = scmp.lt.s32.totalorder %s169_s26, %s169_s26 }
  0x12   : > { %p800_p11 = pnand %p501_p9, %p771_p1  ;;  %p590_p7 = scmp.lt.s32.totalorder %s581_s29, %s581_s29 }
  0x14   : > { %p572_p12 = pneg %p800_p11  ;;  %p591_p6 = por %p590_p7, %p589_p5 }
  0x16   : > { %p584_p0 = pnand %p582_p13, %p572_p12 }
  0x18   : > { %p585_p3 = pneg %p584_p0 }
  0x1a   : > { %p592_p4 = pnand %p591_p6, %p585_p3 }
  0x1c   : > { %595 = shalt.err (!%p592_p4)
}
  0x1d   : > { %s711_s30 = smov 128   ;;  %s712_s4 = smov 8  }
  0x1e   : > { %504 = dma.hbm_to_vmem [thread:$0]  (!%p800_p11), %s914_s1, 512, %s169_s26, [#allocation6], %s711_s30, %s711_s30, %s712_s4  }
  0x1f   : > { %p37_p6 = scmp.ge.s32.totalorder %s35_s28, 2  ;;  %s48_s7 = sadd.s32 1, %s696_s14 }
  0x20   : > { %p55_p4 = scmp.ne.s32.totalorder %s696_s14, %s692_s13  ;;  %p56_p9 = scmp.eq.s32.totalorder %s708_s17, 0 }
  0x21   : > { %s936_s28 = smov (%p37_p6, %s35_s28), 0  ;;  %p514_p0 = scmp.lt.s32.totalorder %s708_s17, 2 }
  0x22   : > { %p818_p12 = por %p56_p9, %p55_p4  ;;  %p824_p13 = por %p775_p2, %p55_p4 }
  0x23   : > { %s43_s10 = ssub.s32 %s704_s16, %s936_s28  ;;  %s188_s11 = sand.u32 1, %s696_s14  }
  0x24   : > { %p46_p11 = scmp.eq.s32.totalorder %s43_s10, 0  ;;  %s465_s18 = sshll.u32 %s188_s11, 3 }
  0x25   : > { %s466_s25 = sshll.u32 %s704_s16, 7  ;;  %s192_s30 = scalar_lea.vmem [#allocation2], %s465_s18 }
  0x26   : > { %s833_s19 = scalar_select %p46_p11, %s696_s14, %s48_s7  }
  0x27   : > { %s198_s29 = scalar_lea.hbm %s913_s0, %s466_s25  ;;  %s200_s4 = sshll.u32 %s192_s30, 4  ;;  %s201_s4 = int_to_ptr.vmem [resolvable:$true] %s200_s4 }
  0x28   : > { %p841_p2 = pnand %p514_p0, %p818_p12  ;;  %s189_s5 = scalar_lea.sflag [#allocation3], %s188_s11 }
  0x29   : > { %s609_s6 = scalar_lea.vmem %s201_s4, 128  ;;  %s713_s7 = smov [#allocation2]  }
  0x2a   : > { %p598_p3 = pneg %p841_p2  ;;  %p610_p5 = scmp.ne.s32.totalorder %s201_s4, %s609_s6 }
  0x2b   : > { %s614_s10 = sshll.u32 %s713_s7, 4  ;;  %s615_s10 = int_to_ptr.vmem [resolvable:$false] %s614_s10 }
  0x2c   : > { %p612_p7 = pnand %p610_p5, %p598_p3  ;;  %s616_s25 = scalar_lea.vmem %s615_s10, 256 }
  0x2d   : > { %p617_p4 = scmp.lt.s32.totalorder %s201_s4, %s615_s10  ;;  %p618_p9 = scmp.lt.s32.totalorder %s616_s25, %s609_s6 }
  0x2e   : > { %p613_p6 = pneg %p612_p7 }
  0x2f   : > { %p619_p11 = por %p618_p9, %p617_p4 }
  0x31   : > { %p620_p10 = pnand %p619_p11, %p613_p6 }
  0x33   : > { %623 = shalt.err (!%p620_p10)
}
  0x34   : > { %508 = dma.hbm_to_vmem [thread:$0]  (!%p841_p2), %s198_s29, 128, %s201_s4, %s189_s5  }
  0x35   : > { %209 = sbr.rel (%p791_p8) target bundleno = 278 (0x116), region = 32  ;;  %s852_s8 = sand.u32 (!%p791_p8), 1, %s692_s13  }
  0x36   : > { %s468_s11 = sshll.u32 (!%p791_p8), %s852_s8, 3  ;;  %s212_s18 = scalar_lea.sflag (!%p791_p8), [#allocation3], %s852_s8 }
  0x37   : > { %s215_s26 = scalar_lea.vmem (!%p791_p8), [#allocation2], %s468_s11  ;;  %p927_p12 = scmp.ne.s32.totalorder (!%p791_p8), %s920_s22, 0 }
  0x3a   : > { %675 = dma.done.wait (%p927_p12), %s212_s18, 128  }
  0x3b   : > { %677 = vsyncadd (%p927_p12), %s212_s18, 4294967168 }
  0x3c   : > { %679 = dma.done.wait (%p771_p1), [#allocation6], 512  }
  0x3d   : > { %681 = vsyncadd (%p771_p1), [#allocation6], 4294966784  ;;  %v714_v0 = vmov 0.0   ;;  %vm715_vm0 = vmmov 0   ;;  %v252_v1 = vld [vmem:[#allocation5 + $0x18] sm:$0xff]  ;;  %v251_v2 = vld [vmem:[#allocation5 + $0x10] sm:$0xff] }
  0x3e   : > { %482 = vmatprep.subr.mxu0 %v714_v0  ;;  %490 = vmatprep.mubr.msk.f32.mxu0 %vm715_vm0, %v714_v0  ;;  %v250_v3 = vld [vmem:[#allocation5 + $0x8] sm:$0xff]  ;;  %v249_v4 = vld [vmem:[#allocation5] sm:$0xff]  ;;  %v248_v5 = vld [vmem:[%s215_s26] sm:$0xff]  ;;  %vm260_vm1 = vcmask 261120   ;;  %s474_s24 = sshll.u32 %s700_s15, 7  ;;  %s244_s27 = scalar_lea.vmem [#allocation7], %s468_s11 }
  0x3f   : > { %483 = vmatpush3.msra.mxu0 %v252_v1  ;;  %v471_v6 = vld [vmem:[%s915_s2] ss:$0 sm:$0xff]  ;;  %s351_s29 = sshll.u32 %s244_s27, 4  ;;  %s871_s21 = scalar_lea.hbm %s916_s3, %s474_s24  ;;  %s352_s29 = int_to_ptr.vmem [resolvable:$true] %s351_s29 }
  0x40   : > { %484 = vmatprep.subr.mxu0 %v714_v0  ;;  %s336_s5 = scalar_lea.sflag [#allocation4], %s852_s8  ;;  %s624_s6 = scalar_lea.vmem %s352_s29, 128 }
  0x41   : > { %485 = vmatpush3.msra.mxu0 %v251_v2  ;;  %p625_p1 = scmp.ne.s32.totalorder %s352_s29, %s624_s6  ;;  %s716_s7 = smov [#allocation7]  }
  0x42   : > { %486 = vmatprep.subr.mxu0 %v714_v0  ;;  %s628_s15 = sshll.u32 %s716_s7, 4  ;;  %s629_s15 = int_to_ptr.vmem [resolvable:$false] %s628_s15 }
  0x43   : > { %487 = vmatpush3.msra.mxu0 %v250_v3  ;;  %p626_p8 = pnand %p625_p1, %p824_p13  ;;  %s630_s10 = scalar_lea.vmem %s629_s15, 256 }
  0x44   : > { %488 = vmatprep.subr.mxu0 %v714_v0  ;;  %p631_p0 = scmp.lt.s32.totalorder %s352_s29, %s629_s15  ;;  %p632_p2 = scmp.lt.s32.totalorder %s630_s10, %s624_s6 }
  0x45   : > { %489 = vmatpush3.msra.mxu0 %v249_v4  ;;  %p627_p10 = pneg %p626_p8 }
  0x46   : > { %491 = vmatmul.mubr.msk.f32.vlgmr.msra.gmra.mxu0 %vm260_vm1, %v248_v5  ;;  %p633_p3 = por %p632_p2, %p631_p0 }
  0x48   : > { %p634_p5 = pnand %p633_p3, %p627_p10 }
 0x106   : > { %v330_v7 = vpop.f32.mrf.mxu0 }
 0x107   : > { %v331_v8 = vadd.f32 %v471_v6, %v330_v7 }
 0x108   : > { %v492_v9 = vpop.f32.mrf.mxu0 }
 0x109   : > { %334 = vst.msk [vmem:[%s244_s27] sm:$0xff] %vm260_vm1, %v331_v8 }
 0x10a   : > { %637 = shalt.err (!%p634_p5)
}
 0x10b   : > { %s638_s25 = scalar_lea.hbm %s871_s21, 128  ;;  %s642_s18 = scalar_lea.hbm %s916_s3, 256 }
 0x10c   : > { %p639_p7 = scmp.ne.s32.totalorder %s871_s21, %s638_s25  ;;  %p643_p9 = scmp.lt.s32.totalorder %s871_s21, %s916_s3 }
 0x10d   : > { %p644_p11 = scmp.lt.s32.totalorder %s642_s18, %s638_s25 }
 0x10e   : > { %p640_p6 = pnand %p639_p7, %p824_p13 }
 0x10f   : > { %p645_p12 = por %p644_p11, %p643_p9 }
 0x110   : > { %p641_p4 = pneg %p640_p6 }
 0x112   : > { %p646_p1 = pnand %p645_p12, %p641_p4 }
 0x114   : > { %649 = shalt.err (!%p646_p1)
}
 0x115   : > { %499 = dma.vmem_to_hbm [thread:$0]  (%p824_p13), %s352_s29, 128, %s871_s21, %s336_s5  }
 0x116 PF: > { %s363_s22 = sand.u32 1, %s688_s12   ;;  %p928_p8 = scmp.ne.s32.totalorder %s921_s23, 0 }
 0x117   : > { %p929_p10 = scmp.ge.s32.totalorder %s708_s17, 2  ;;  %s364_s24 = scalar_lea.sflag [#allocation4], %s363_s22 }
 0x119   : > { %p510_p0 = pnand %p929_p10, %p928_p8 }
 0x11b   : > { %p511_p2 = pneg %p510_p0 }
 0x11d   : > { %683 = dma.done.wait (%p511_p2), %s364_s24, 128  }
 0x11e   : > { %685 = vsyncadd (%p511_p2), %s364_s24, 4294967168  ;;  %s20_s17 = sadd.s32 1, %s708_s17   ;;  %s930_s12 = smov %s692_s13 }
 0x11f   : > { %p17_p3 = scmp.ge.s32.totalorder %s20_s17, 4   ;;  %s931_s13 = smov %s696_s14 }
 0x120   : > { %s932_s14 = smov %s833_s19  ;;  %s933_s15 = smov %s704_s16 }
 0x121   : > { %s934_s16 = smov %s936_s28  ;;  %19 = sbr.rel (!%p17_p3) target bundleno = 7 (0x7), region = 85 }
 0x126   :  { %369 = vsyncpa [#allocation3], 1 }
 0x127   :  { %371 = vsyncpa [#allocation3 + $0x1], 1 }
 0x128   :  { %372 = vsyncpa [#allocation6], 1 }
 0x129   :  { %373 = vsyncpa [#allocation4], 1 }
 0x12a   :  { %375 = vsyncpa [#allocation4 + $0x1], 1 }

</bundles_post_ra>
